<compile_context>
chip_gen: v7x
topology: tpu7x:2x2x1
jax: 0.10.0
libtpu: 0.0.40
codegen_flags: <defaults>
</compile_context>

<pallas_src>
import math

import jax
import jax.numpy as jnp
from jax.experimental import pallas as pl
from jax.experimental.pallas import tpu as pltpu


# --------------------------------------------------------------------------- helpers

def _round_up(x: int, m: int) -> int:
    return ((x + m - 1) // m) * m


def _fold_bn(p, eps=1e-5):
    """Fold BatchNorm1d (eval) into the preceding Linear: BN(Linear(x)) == x@W' + b'."""
    scale = p["gamma"] * jax.lax.rsqrt(p["var"] + eps)          # (1, Fo)
    w = p["w"] * scale                                          # (Fi, Fo)
    b = (p["b"] - p["mean"]) * scale + p["beta"]                # (1, Fo)
    return w, b


def _device_kind() -> str:
    try:
        return jax.devices()[0].device_kind.lower()
    except Exception:
        return ""


def _vmem_capacity_bytes() -> int:
    try:
        return int(pltpu.get_tpu_info().vmem_capacity_bytes)
    except Exception:
        return (64 if "v7" in _device_kind() else 128) * 2**20


def _default_ew_dtype(matmul_dtype):
    """Element-wise (bias/GELU/residual) dtype: bf16 on v6e/v7x, f32 on v5e and older."""
    if jnp.dtype(matmul_dtype) == jnp.dtype(jnp.float32):
        return jnp.float32
    kind = _device_kind()
    if any(v in kind for v in ("v2", "v3", "v4", "v5")):        # no bf16 VPU/EUP
        return jnp.float32
    return jnp.bfloat16


# --------------------------------------------------------------------------- kernel

def _make_fused_kernel(n_layers, act_flags, res_flags, matmul_dtype, ew_dtype):
    """Fused [Linear (+BN folded) (+GELU) (+residual)] x n_layers kernel body.

    Ref order: x_ref, (w_0, b_0, w_1, b_1, ...), o_ref. Activations stay in vregs/VMEM for
    the whole stack; weights arrive pre-cast to `matmul_dtype`; element-wise math in
    `ew_dtype`; MXU accumulation + bias add in f32.
    """
    mm_dt = jnp.dtype(matmul_dtype)
    ew_dt = jnp.dtype(ew_dtype)
    c0 = 0.7978845608028654     # sqrt(2/pi)
    c1 = 0.044715

    def gelu_tanh(y):
        # tanh-approx GELU: tanh lowers to a single EUP op (own VLIW slot), unlike the
        # multi-op VALU polynomial that lax.erf lowers to. Python-float constants keep
        # the array's (possibly bf16) dtype via weak typing.
        return 0.5 * y * (1.0 + jnp.tanh(c0 * y * (1.0 + c1 * y * y)))

    def kernel(*refs):
        x_ref = refs[0]
        o_ref = refs[-1]
        wb = refs[1:-1]

        x = x_ref[...].astype(ew_dt)                            # (tB, F0_pad)
        for i in range(n_layers):
            w = wb[2 * i][...]                                  # (Fi_pad, Fo_pad) matmul dtype
            b = wb[2 * i + 1][...]                              # (1,  Fo_pad) f32
            lhs = x if x.dtype == mm_dt else x.astype(mm_dt)
            y = jnp.dot(lhs, w, preferred_element_type=jnp.float32) + b   # f32 acc + bias
            if i < n_layers - 1:
                y = y.astype(ew_dt)
                if act_flags[i]:
                    y = gelu_tanh(y)
                if res_flags[i]:
                    y = y + x                                   # residual_as_possible
            x = y
        o_ref[...] = x.astype(o_ref.dtype)

    return kernel


# --------------------------------------------------------------------------- wrapper

def mlp_fused(x, params, sizes, *, matmul_dtype=jnp.bfloat16, ew_dtype=None, eps=1e-5):
    """Single fused pallas_call for the whole MLP stack (inference semantics)."""
    B, F0 = x.shape
    n_layers = len(params)
    assert F0 == sizes[0] and n_layers == len(sizes) - 1

    if ew_dtype is None:
        ew_dtype = _default_ew_dtype(matmul_dtype)

    # ---- BN folding + per-layer flags (trace-time, in the wrapper).
    ws, bs, act_flags, res_flags = [], [], [], []
    for i, p in enumerate(params):
        is_last = i == n_layers - 1
        w, b = (p["w"], p["b"]) if is_last else _fold_bn(p, eps)
        ws.append(w)
        bs.append(b)
        act_flags.append(not is_last)
        res_flags.append((not is_last) and (sizes[i] == sizes[i + 1]))

    # ---- Feature padding to 128 lanes (lane-dense loads/stores, full MXU columns).
    LANE = 128
    fpad = [_round_up(s, LANE) for s in sizes]

    # ---- Per-generation VMEM budget and a batch tile derived from it.
    vmem_cap = _vmem_capacity_bytes()
    budget = int(vmem_cap * 0.85)            # ~54 MiB on v7x, ~109 MiB on v5e/v6e

    mm_item = jnp.dtype(matmul_dtype).itemsize
    ew_item = jnp.dtype(ew_dtype).itemsize
    x_item = jnp.dtype(x.dtype).itemsize
    cast_item = mm_item if jnp.dtype(matmul_dtype) != jnp.dtype(ew_dtype) else 0

    # Weights/bias are single-buffered (constant index_map => one DMA for the whole grid).
    weight_bytes = sum(fpad[i] * fpad[i + 1] * mm_item + fpad[i + 1] * 4
                       for i in range(n_layers))
    # Live activation bytes per batch row: worst layer's input (ew + optional matmul cast
    # copy) + f32 MXU output, plus double-buffered kernel input/output blocks.
    inter_row = max(fpad[i] * (ew_item + cast_item) + fpad[i + 1] * 4
                    for i in range(n_layers))
    io_row = 2 * fpad[0] * x_item + 2 * fpad[-1] * x_item
    row_bytes = inter_row + io_row

    headroom = 2 * 2**20                     # Mosaic internal scratch headroom
    avail = max(0, budget - weight_bytes - headroom)
    tile_cap = max(8, (avail // max(row_bytes, 1)) // 8 * 8)

    b_ceil = _round_up(B, 8)
    tile_b = min(1024, tile_cap, b_ceil)
    if b_ceil // tile_b < 2 and b_ceil > 8:
        # Prefer >= 2 batch tiles so both v7x TensorCores get work on the "parallel" axis.
        tile_b = max(8, _round_up((B + 1) // 2, 8))
    b_pad = _round_up(B, tile_b)
    grid = (b_pad // tile_b,)

    # ---- Operands (skip the zero-pad copy of x when no padding is required).
    if b_pad == B and fpad[0] == F0:
        x_p = x
    else:
        x_p = jnp.zeros((b_pad, fpad[0]), x.dtype).at[:B, :F0].set(x)

    operands = [x_p]
    for i in range(n_layers):
        fi, fo = sizes[i], sizes[i + 1]
        fip, fop = fpad[i], fpad[i + 1]
        # Zero-padded rows/cols keep the padded output region exactly zero through
        # GELU/residual, so padding never contaminates valid lanes.
        w_p = (jnp.zeros((fip, fop), jnp.float32).at[:fi, :fo].set(ws[i])
               .astype(matmul_dtype))
        b_p = jnp.zeros((1, fop), jnp.float32).at[:, :fo].set(bs[i])
        operands += [w_p, b_p]

    vmem_limit = int(min(budget,
                         max(32 * 2**20, 2 * (weight_bytes + tile_b * row_bytes))))

    # ---- Scheduler hint.
    flops = 2 * b_pad * sum(fpad[i] * fpad[i + 1] for i in range(n_layers))
    transc = b_pad * sum(fpad[i + 1] for i in range(n_layers - 1))   # one tanh per hidden elt
    bytes_acc = (sum(int(op.size) * op.dtype.itemsize for op in operands)
                 + b_pad * fpad[-1] * x_item)

    kernel = _make_fused_kernel(n_layers, act_flags, res_flags, matmul_dtype, ew_dtype)
    out_shape = jax.ShapeDtypeStruct((b_pad, fpad[-1]), x.dtype)
    out_spec = pl.BlockSpec((tile_b, fpad[-1]), lambda g: (g, 0))

    def _call(weight_pipeline_mode):
        in_specs = [pl.BlockSpec((tile_b, fpad[0]), lambda g: (g, 0))]
        for i in range(n_layers):
            fip, fop = fpad[i], fpad[i + 1]
            if weight_pipeline_mode is None:
                in_specs += [pl.BlockSpec((fip, fop), lambda g: (0, 0)),
                             pl.BlockSpec((1, fop), lambda g: (0, 0))]
            else:
                # Constant block index => weights stay VMEM-resident; single-buffering
                # halves their VMEM footprint with zero extra DMA.
                in_specs += [pl.BlockSpec((fip, fop), lambda g: (0, 0),
                                          pipeline_mode=weight_pipeline_mode),
                             pl.BlockSpec((1, fop), lambda g: (0, 0),
                                          pipeline_mode=weight_pipeline_mode)]
        return pl.pallas_call(
            kernel,
            out_shape=out_shape,
            grid=grid,
            in_specs=in_specs,
            out_specs=out_spec,
            compiler_params=pltpu.CompilerParams(
                dimension_semantics=("parallel",),   # batch tiles independent (BN is eval)
                vmem_limit_bytes=vmem_limit),
            cost_estimate=pl.CostEstimate(flops=flops, transcendentals=transc,
                                          bytes_accessed=bytes_acc),
        )(*operands)

    try:
        y_p = _call(pl.Buffered(1))
    except Exception:
        # Fallback if this jax build rejects buffer_count=1 on the grid pipeline.
        y_p = _call(None)

    if b_pad == B and fpad[-1] == sizes[-1]:
        return y_p
    return y_p[:B, :sizes[-1]]


def mlp_forward(batch, params, sizes, *, matmul_dtype=jnp.bfloat16, ew_dtype=None):
    """Equivalent of MultiLayerPerceptron.forward: batch['logits'] = MLP(batch['aggregation'])."""
    out = dict(batch)
    out["logits"] = mlp_fused(batch["aggregation"], params, sizes,
                              matmul_dtype=matmul_dtype, ew_dtype=ew_dtype)
    return out


# --------------------------------------------------------------------------- params / reference

def init_mlp_params(key, sizes, randomize_bn=True):
    """PyTorch Linear-style uniform init; BN stats randomized to exercise the BN fold."""
    params = []
    n_layers = len(sizes) - 1
    for i in range(n_layers):
        fan_in, fan_out = sizes[i], sizes[i + 1]
        key, kw, kb, kg, kbe, km, kv = jax.random.split(key, 7)
        bound = 1.0 / math.sqrt(fan_in)
        w = jax.random.uniform(kw, (fan_in, fan_out), jnp.float32, -bound, bound)
        b = jax.random.uniform(kb, (1, fan_out), jnp.float32, -bound, bound)
        if randomize_bn:
            gamma = jax.random.uniform(kg, (1, fan_out), jnp.float32, 0.5, 1.5)
            beta = 0.1 * jax.random.normal(kbe, (1, fan_out), jnp.float32)
            mean = 0.1 * jax.random.normal(km, (1, fan_out), jnp.float32)
            var = jax.random.uniform(kv, (1, fan_out), jnp.float32, 0.5, 1.5)
        else:  # BatchNorm1d defaults
            gamma = jnp.ones((1, fan_out), jnp.float32)
            beta = jnp.zeros((1, fan_out), jnp.float32)
            mean = jnp.zeros((1, fan_out), jnp.float32)
            var = jnp.ones((1, fan_out), jnp.float32)
        params.append(dict(w=w, b=b, gamma=gamma, beta=beta, mean=mean, var=var))
    return params


def mlp_reference(batch, params, sizes, eps=1e-5, approximate_gelu=False):
    """Pure-JAX reference (unfused BN). approximate_gelu=True matches the kernel's tanh GELU."""
    x = batch["aggregation"]
    n_layers = len(params)
    for i, p in enumerate(params):
        is_last = i == n_layers - 1
        y = x @ p["w"] + p["b"]
        if not is_last:
            y = (y - p["mean"]) * jax.lax.rsqrt(p["var"] + eps) * p["gamma"] + p["beta"]
            if approximate_gelu:
                c0 = math.sqrt(2.0 / math.pi)
                y = 0.5 * y * (1.0 + jnp.tanh(c0 * (y + 0.044715 * y ** 3)))
            else:  # torch.nn.GELU default (erf form)
                y = 0.5 * y * (1.0 + jax.lax.erf(y / math.sqrt(2.0)))
            if sizes[i] == sizes[i + 1]:
                y = y + x
        x = y
    return x


# --------------------------------------------------------------------------- main

if __name__ == "__main__":
    sizes = (32, 32, 16)     # sizes[0]==sizes[1] -> residual on the first hidden block
    B = 8

    key = jax.random.PRNGKey(0)
    kp, kx = jax.random.split(key)
    params = init_mlp_params(kp, sizes)
    x = jax.random.normal(kx, (B, sizes[0]), jnp.float32)
    batch = {"aggregation": x}

    ref_tanh = mlp_reference(batch, params, sizes, approximate_gelu=True)
    ref_erf = mlp_reference(batch, params, sizes, approximate_gelu=False)

    # f32 matmul + f32 elementwise path: validates fusion / BN folding / padding exactly.
    out_f32 = mlp_forward(batch, params, sizes, matmul_dtype=jnp.float32)
    logits_f32 = jax.block_until_ready(out_f32["logits"])
    assert logits_f32.shape == (B, sizes[-1])
    assert jnp.allclose(logits_f32, ref_tanh, atol=1e-4, rtol=1e-4), \
        "f32 path mismatch vs tanh-GELU reference"
    # tanh-approx GELU vs torch's default erf GELU: small bounded approximation error.
    assert jnp.allclose(logits_f32, ref_erf, atol=5e-2, rtol=5e-2), \
        "tanh-GELU drifted too far from erf reference"

    # bf16 matmul path (perf default; bf16 elementwise on v6e/v7x, f32 on v5e).
    out_bf16 = mlp_forward(batch, params, sizes, matmul_dtype=jnp.bfloat16)
    logits_bf16 = jax.block_until_ready(out_bf16["logits"])
    assert logits_bf16.shape == (B, sizes[-1])
    assert jnp.allclose(logits_bf16, ref_tanh, atol=5e-2, rtol=5e-2), \
        "bf16 path mismatch vs reference"

    print("KERNEL_OK")
</pallas_src>

<mosaic_0001>
module attributes {stable_mosaic.version = 11 : i64} {
  func.func @kernel(%arg0: i32, %arg1: memref<8x128xf32, #tpu.memory_space<vmem>>, %arg2: memref<128x128xf32, #tpu.memory_space<vmem>>, %arg3: memref<1x128xf32, #tpu.memory_space<vmem>>, %arg4: memref<128x128xf32, #tpu.memory_space<vmem>>, %arg5: memref<1x128xf32, #tpu.memory_space<vmem>>, %arg6: memref<8x128xf32, #tpu.memory_space<vmem>>) attributes {dimension_semantics = [#tpu.dimension_semantics<parallel>], iteration_bounds = array<i64: 1>, scalar_prefetch = 0 : i64, scratch_operands = 0 : i64, tpu.core_type = #tpu.core_type<tc>, window_params = [{transform_indices = @transform_0, window_bounds = array<i64: 8, 128>}, {pipeline_mode = #tpu.pipeline_mode<synchronous>, transform_indices = @transform_1, window_bounds = array<i64: 128, 128>}, {pipeline_mode = #tpu.pipeline_mode<synchronous>, transform_indices = @transform_2, window_bounds = array<i64: 1, 128>}, {pipeline_mode = #tpu.pipeline_mode<synchronous>, transform_indices = @transform_3, window_bounds = array<i64: 128, 128>}, {pipeline_mode = #tpu.pipeline_mode<synchronous>, transform_indices = @transform_4, window_bounds = array<i64: 1, 128>}, {transform_indices = @transform_5, window_bounds = array<i64: 8, 128>}]} {
    %c0 = arith.constant 0 : index
    %c0_0 = arith.constant 0 : index
    %0 = vector.load %arg1[%c0, %c0_0] : memref<8x128xf32, #tpu.memory_space<vmem>>, vector<8x128xf32>
    %c0_1 = arith.constant 0 : index
    %c0_2 = arith.constant 0 : index
    %1 = vector.load %arg2[%c0_1, %c0_2] : memref<128x128xf32, #tpu.memory_space<vmem>>, vector<128x128xf32>
    %c0_3 = arith.constant 0 : index
    %c0_4 = arith.constant 0 : index
    %2 = vector.load %arg3[%c0_3, %c0_4] : memref<1x128xf32, #tpu.memory_space<vmem>>, vector<1x128xf32>
    %cst = arith.constant dense<0.000000e+00> : vector<8x128xf32>
    %3 = tpu.matmul %0, %1, %cst {dimension_numbers = #tpu.dot_dimension_numbers<[1], [0], [0], [1], [0, 0, 1, 1], [], []>} : vector<8x128xf32>, vector<128x128xf32>, vector<8x128xf32> -> vector<8x128xf32>
    %4 = vector.broadcast %2 : vector<1x128xf32> to vector<8x128xf32>
    %5 = arith.addf %3, %4 : vector<8x128xf32>
    %cst_5 = arith.constant 5.000000e-01 : f32
    %6 = vector.broadcast %cst_5 : f32 to vector<8x128xf32>
    %7 = arith.mulf %6, %5 : vector<8x128xf32>
    %cst_6 = arith.constant 0.797884583 : f32
    %8 = vector.broadcast %cst_6 : f32 to vector<8x128xf32>
    %9 = arith.mulf %8, %5 : vector<8x128xf32>
    %cst_7 = arith.constant 4.471500e-02 : f32
    %10 = vector.broadcast %cst_7 : f32 to vector<8x128xf32>
    %11 = arith.mulf %10, %5 : vector<8x128xf32>
    %12 = arith.mulf %11, %5 : vector<8x128xf32>
    %cst_8 = arith.constant 1.000000e+00 : f32
    %13 = vector.broadcast %cst_8 : f32 to vector<8x128xf32>
    %14 = arith.addf %13, %12 : vector<8x128xf32>
    %15 = arith.mulf %9, %14 : vector<8x128xf32>
    %16 = math.tanh %15 : vector<8x128xf32>
    %cst_9 = arith.constant 1.000000e+00 : f32
    %17 = vector.broadcast %cst_9 : f32 to vector<8x128xf32>
    %18 = arith.addf %17, %16 : vector<8x128xf32>
    %19 = arith.mulf %7, %18 : vector<8x128xf32>
    %20 = arith.addf %19, %0 : vector<8x128xf32>
    %c0_10 = arith.constant 0 : index
    %c0_11 = arith.constant 0 : index
    %21 = vector.load %arg4[%c0_10, %c0_11] : memref<128x128xf32, #tpu.memory_space<vmem>>, vector<128x128xf32>
    %c0_12 = arith.constant 0 : index
    %c0_13 = arith.constant 0 : index
    %22 = vector.load %arg5[%c0_12, %c0_13] : memref<1x128xf32, #tpu.memory_space<vmem>>, vector<1x128xf32>
    %cst_14 = arith.constant dense<0.000000e+00> : vector<8x128xf32>
    %23 = tpu.matmul %20, %21, %cst_14 {dimension_numbers = #tpu.dot_dimension_numbers<[1], [0], [0], [1], [0, 0, 1, 1], [], []>} : vector<8x128xf32>, vector<128x128xf32>, vector<8x128xf32> -> vector<8x128xf32>
    %24 = vector.broadcast %22 : vector<1x128xf32> to vector<8x128xf32>
    %25 = arith.addf %23, %24 : vector<8x128xf32>
    %c0_15 = arith.constant 0 : index
    %c0_16 = arith.constant 0 : index
    %26 = vector.load %arg6[%c0_15, %c0_16] : memref<8x128xf32, #tpu.memory_space<vmem>>, vector<8x128xf32>
    tpu.vector_store %arg6[%c0_15, %c0_16], %25 {strides = array<i32>} : memref<8x128xf32, #tpu.memory_space<vmem>>, vector<8x128xf32>,
    return
  }
  func.func @transform_0(%arg0: i32) -> (i32, i32) {
    %c0_i32 = arith.constant 0 : i32
    %c0_i32_0 = arith.constant 0 : i32
    return %arg0, %c0_i32 : i32, i32
  }
  func.func @transform_1(%arg0: i32) -> (i32, i32) {
    %c0_i32 = arith.constant 0 : i32
    %c0_i32_0 = arith.constant 0 : i32
    %c0_i32_1 = arith.constant 0 : i32
    return %c0_i32, %c0_i32_0 : i32, i32
  }
  func.func @transform_2(%arg0: i32) -> (i32, i32) {
    %c0_i32 = arith.constant 0 : i32
    %c0_i32_0 = arith.constant 0 : i32
    %c0_i32_1 = arith.constant 0 : i32
    return %c0_i32, %c0_i32_0 : i32, i32
  }
  func.func @transform_3(%arg0: i32) -> (i32, i32) {
    %c0_i32 = arith.constant 0 : i32
    %c0_i32_0 = arith.constant 0 : i32
    %c0_i32_1 = arith.constant 0 : i32
    return %c0_i32, %c0_i32_0 : i32, i32
  }
  func.func @transform_4(%arg0: i32) -> (i32, i32) {
    %c0_i32 = arith.constant 0 : i32
    %c0_i32_0 = arith.constant 0 : i32
    %c0_i32_1 = arith.constant 0 : i32
    return %c0_i32, %c0_i32_0 : i32, i32
  }
  func.func @transform_5(%arg0: i32) -> (i32, i32) {
    %c0_i32 = arith.constant 0 : i32
    %c0_i32_0 = arith.constant 0 : i32
    return %arg0, %c0_i32 : i32, i32
  }
}

module attributes {stable_mosaic.version = 11 : i64} {
  func.func @kernel(%arg0: i32, %arg1: memref<8x128xf32, #tpu.memory_space<vmem>>, %arg2: memref<128x128xf32, #tpu.memory_space<vmem>>, %arg3: memref<1x128xf32, #tpu.memory_space<vmem>>, %arg4: memref<128x128xf32, #tpu.memory_space<vmem>>, %arg5: memref<1x128xf32, #tpu.memory_space<vmem>>, %arg6: memref<8x128xf32, #tpu.memory_space<vmem>>) attributes {dimension_semantics = [#tpu.dimension_semantics<parallel>], iteration_bounds = array<i64: 1>, scalar_prefetch = 0 : i64, scratch_operands = 0 : i64, tpu.core_type = #tpu.core_type<tc>, window_params = [{transform_indices = @transform_0, window_bounds = array<i64: 8, 128>}, {pipeline_mode = #tpu.pipeline_mode<synchronous>, transform_indices = @transform_1, window_bounds = array<i64: 128, 128>}, {pipeline_mode = #tpu.pipeline_mode<synchronous>, transform_indices = @transform_2, window_bounds = array<i64: 1, 128>}, {pipeline_mode = #tpu.pipeline_mode<synchronous>, transform_indices = @transform_3, window_bounds = array<i64: 128, 128>}, {pipeline_mode = #tpu.pipeline_mode<synchronous>, transform_indices = @transform_4, window_bounds = array<i64: 1, 128>}, {transform_indices = @transform_5, window_bounds = array<i64: 8, 128>}]} {
    %c0 = arith.constant 0 : index
    %c0_0 = arith.constant 0 : index
    %0 = vector.load %arg1[%c0, %c0_0] : memref<8x128xf32, #tpu.memory_space<vmem>>, vector<8x128xf32>
    %c0_1 = arith.constant 0 : index
    %c0_2 = arith.constant 0 : index
    %1 = vector.load %arg2[%c0_1, %c0_2] : memref<128x128xf32, #tpu.memory_space<vmem>>, vector<128x128xf32>
    %c0_3 = arith.constant 0 : index
    %c0_4 = arith.constant 0 : index
    %2 = vector.load %arg3[%c0_3, %c0_4] : memref<1x128xf32, #tpu.memory_space<vmem>>, vector<1x128xf32>
    %cst = arith.constant dense<0.000000e+00> : vector<8x128xf32>
    %3 = tpu.matmul %0, %1, %cst {dimension_numbers = #tpu.dot_dimension_numbers<[1], [0], [0], [1], [0, 0, 1, 1], [], []>} : vector<8x128xf32>, vector<128x128xf32>, vector<8x128xf32> -> vector<8x128xf32>
    %4 = vector.broadcast %2 : vector<1x128xf32> to vector<8x128xf32>
    %5 = arith.addf %3, %4 : vector<8x128xf32>
    %cst_5 = arith.constant 5.000000e-01 : f32
    %6 = vector.broadcast %cst_5 : f32 to vector<8x128xf32>
    %7 = arith.mulf %6, %5 : vector<8x128xf32>
    %cst_6 = arith.constant 0.797884583 : f32
    %8 = vector.broadcast %cst_6 : f32 to vector<8x128xf32>
    %9 = arith.mulf %8, %5 : vector<8x128xf32>
    %cst_7 = arith.constant 4.471500e-02 : f32
    %10 = vector.broadcast %cst_7 : f32 to vector<8x128xf32>
    %11 = arith.mulf %10, %5 : vector<8x128xf32>
    %12 = arith.mulf %11, %5 : vector<8x128xf32>
    %cst_8 = arith.constant 1.000000e+00 : f32
    %13 = vector.broadcast %cst_8 : f32 to vector<8x128xf32>
    %14 = arith.addf %13, %12 : vector<8x128xf32>
    %15 = arith.mulf %9, %14 : vector<8x128xf32>
    %16 = math.tanh %15 : vector<8x128xf32>
    %cst_9 = arith.constant 1.000000e+00 : f32
    %17 = vector.broadcast %cst_9 : f32 to vector<8x128xf32>
    %18 = arith.addf %17, %16 : vector<8x128xf32>
    %19 = arith.mulf %7, %18 : vector<8x128xf32>
    %20 = arith.addf %19, %0 : vector<8x128xf32>
    %c0_10 = arith.constant 0 : index
    %c0_11 = arith.constant 0 : index
    %21 = vector.load %arg4[%c0_10, %c0_11] : memref<128x128xf32, #tpu.memory_space<vmem>>, vector<128x128xf32>
    %c0_12 = arith.constant 0 : index
    %c0_13 = arith.constant 0 : index
    %22 = vector.load %arg5[%c0_12, %c0_13] : memref<1x128xf32, #tpu.memory_space<vmem>>, vector<1x128xf32>
    %cst_14 = arith.constant dense<0.000000e+00> : vector<8x128xf32>
    %23 = tpu.matmul %20, %21, %cst_14 {dimension_numbers = #tpu.dot_dimension_numbers<[1], [0], [0], [1], [0, 0, 1, 1], [], []>} : vector<8x128xf32>, vector<128x128xf32>, vector<8x128xf32> -> vector<8x128xf32>
    %24 = vector.broadcast %22 : vector<1x128xf32> to vector<8x128xf32>
    %25 = arith.addf %23, %24 : vector<8x128xf32>
    %c0_15 = arith.constant 0 : index
    %c0_16 = arith.constant 0 : index
    %26 = vector.load %arg6[%c0_15, %c0_16] : memref<8x128xf32, #tpu.memory_space<vmem>>, vector<8x128xf32>
    tpu.vector_store %arg6[%c0_15, %c0_16], %25 {strides = array<i32>} : memref<8x128xf32, #tpu.memory_space<vmem>>, vector<8x128xf32>,
    return
  }
  func.func @transform_0(%arg0: i32) -> (i32, i32) {
    %c0_i32 = arith.constant 0 : i32
    %c0_i32_0 = arith.constant 0 : i32
    return %arg0, %c0_i32 : i32, i32
  }
  func.func @transform_1(%arg0: i32) -> (i32, i32) {
    %c0_i32 = arith.constant 0 : i32
    %c0_i32_0 = arith.constant 0 : i32
    %c0_i32_1 = arith.constant 0 : i32
    return %c0_i32, %c0_i32_0 : i32, i32
  }
  func.func @transform_2(%arg0: i32) -> (i32, i32) {
    %c0_i32 = arith.constant 0 : i32
    %c0_i32_0 = arith.constant 0 : i32
    %c0_i32_1 = arith.constant 0 : i32
    return %c0_i32, %c0_i32_0 : i32, i32
  }
  func.func @transform_3(%arg0: i32) -> (i32, i32) {
    %c0_i32 = arith.constant 0 : i32
    %c0_i32_0 = arith.constant 0 : i32
    %c0_i32_1 = arith.constant 0 : i32
    return %c0_i32, %c0_i32_0 : i32, i32
  }
  func.func @transform_4(%arg0: i32) -> (i32, i32) {
    %c0_i32 = arith.constant 0 : i32
    %c0_i32_0 = arith.constant 0 : i32
    %c0_i32_1 = arith.constant 0 : i32
    return %c0_i32, %c0_i32_0 : i32, i32
  }
  func.func @transform_5(%arg0: i32) -> (i32, i32) {
    %c0_i32 = arith.constant 0 : i32
    %c0_i32_0 = arith.constant 0 : i32
    return %arg0, %c0_i32 : i32, i32
  }
}

</mosaic_0001>

<bundles_post_ra>
// kernel: tpu_custom_call.1
= control target key start
LH: loop header
LB: loop body
LE: loop exit
PB: predicated region body
PF: predicated region fallthrough
CT: control target
= control target key end

     0   :  { %10 = vsyncpa [#allocation3], 0  ;;  %s648_s0 = inlined_call_operand.hbm [shape: f32[8,128], index: 0, kind: input, shape index: {}]   ;;  %s649_s1 = inlined_call_operand.hbm [shape: f32[128,128], index: 1, kind: input, shape index: {}]   ;;  %s650_s2 = inlined_call_operand.vmem [shape: f32[1,128], index: 2, kind: input, shape index: {}]   ;;  %s651_s3 = inlined_call_operand.hbm [shape: f32[128,128], index: 3, kind: input, shape index: {}]   ;;  %s652_s4 = inlined_call_operand.vmem [shape: f32[1,128], index: 4, kind: input, shape index: {}]   ;;  %s653_s5 = inlined_call_operand.hbm [shape: f32[8,128], index: 5, kind: output, shape index: {}]  }
   0x1   :  { %11 = vsyncpa [#allocation6], 0 }
   0x2   :  { %12 = vsyncpa [#allocation4], 0  ;;  %s533_s18 = smov [#allocation5]   ;;  %s439_s22 = scalar_lea.hbm %s649_s1, 2048 }
   0x3   :  { %s28_s19 = sshll.u32 %s533_s18, 4  ;;  %p440_p0 = scmp.ne.s32.totalorder %s649_s1, %s439_s22  ;;  %s29_s19 = int_to_ptr.vmem [resolvable:$true] %s28_s19 }
   0x4   :  { %p443_p1 = scmp.lt.u32.totalorder %s439_s22, %s649_s1 }
   0x6   :  { %p445_p2 = pnand %p443_p1, %p440_p0 }
   0x8   :  { %448 = shalt.err (!%p445_p2)
}
   0x9   :  { %s449_s27 = scalar_lea.vmem %s29_s19, 2048  ;;  %p454_p4 = scmp.lt.s32.totalorder %s29_s19, %s29_s19 }
   0xa   :  { %p450_p3 = scmp.ne.s32.totalorder %s29_s19, %s449_s27  ;;  %p455_p5 = scmp.lt.s32.totalorder %s449_s27, %s449_s27 }
   0xc   :  { %p456_p6 = por %p455_p5, %p454_p4 }
   0xe   :  { %p457_p7 = pnand %p456_p6, %p450_p3 }
  0x10   :  { %460 = shalt.err (!%p457_p7)
}
  0x11   :  { %s534_s28 = smov 128   ;;  %s535_s29 = smov 8  }
  0x12   :  { %34 = dma.hbm_to_vmem [thread:$0]  %s649_s1, 2048, %s29_s19, [#allocation6], %s534_s28, %s534_s28, %s535_s29  }
  0x13   :  { %s536_s7 = smov [#allocation2]   ;;  %s537_s9 = smov [#allocation7]  }
  0x14   :  { %s19_s8 = sshll.u32 %s536_s7, 4  ;;  %s42_s10 = sshll.u32 %s537_s9, 4  ;;  %s20_s8 = int_to_ptr.vmem [resolvable:$true] %s19_s8  ;;  %s43_s10 = int_to_ptr.vmem [resolvable:$true] %s42_s10 }
  0x15   :  { %s461_s13 = scalar_lea.hbm %s648_s0, 128 }
  0x16   :  { %p462_p8 = scmp.ne.s32.totalorder %s648_s0, %s461_s13  ;;  %p465_p9 = scmp.lt.u32.totalorder %s461_s13, %s648_s0 }
  0x18   :  { %p467_p10 = pnand %p465_p9, %p462_p8 }
  0x1a   :  { %470 = shalt.err (!%p467_p10)
}
  0x1b   :  { %s471_s1 = scalar_lea.vmem %s20_s8, 128  ;;  %p476_p12 = scmp.lt.s32.totalorder %s20_s8, %s20_s8 }
  0x1c   :  { %p472_p11 = scmp.ne.s32.totalorder %s20_s8, %s471_s1  ;;  %p477_p13 = scmp.lt.s32.totalorder %s471_s1, %s471_s1 }
  0x1e   :  { %p478_p0 = por %p477_p13, %p476_p12 }
  0x20   :  { %p479_p1 = pnand %p478_p0, %p472_p11 }
  0x22   :  { %482 = shalt.err (!%p479_p1)
}
  0x23   :  { %22 = dma.hbm_to_vmem [thread:$0]  %s648_s0, 128, %s20_s8, [#allocation3]  }
  0x24   :  { %s483_s22 = scalar_lea.hbm %s651_s3, 2048 }
  0x25   :  { %p484_p2 = scmp.ne.s32.totalorder %s651_s3, %s483_s22  ;;  %p487_p3 = scmp.lt.u32.totalorder %s483_s22, %s651_s3 }
  0x27   :  { %p489_p4 = pnand %p487_p3, %p484_p2 }
  0x29   :  { %492 = shalt.err (!%p489_p4)
}
  0x2a   :  { %s493_s27 = scalar_lea.vmem %s43_s10, 2048  ;;  %p498_p6 = scmp.lt.s32.totalorder %s43_s10, %s43_s10 }
  0x2b   :  { %p494_p5 = scmp.ne.s32.totalorder %s43_s10, %s493_s27  ;;  %p499_p7 = scmp.lt.s32.totalorder %s493_s27, %s493_s27 }
  0x2d   :  { %p500_p8 = por %p499_p7, %p498_p6 }
  0x2f   :  { %p501_p9 = pnand %p500_p8, %p494_p5 }
  0x31   :  { %504 = shalt.err (!%p501_p9)
}
  0x32   :  { %48 = dma.hbm_to_vmem [thread:$0]  %s651_s3, 2048, %s43_s10, [#allocation6], %s534_s28, %s534_s28, %s535_s29  }
  0x33   :  { %527 = dma.done.wait [#allocation3], 128  }
  0x34   :  { %528 = vsyncadd [#allocation3], 4294967168 }
  0x35   :  { %529 = dma.done.wait [#allocation6], 4096  }
  0x36   :  { %530 = vsyncadd [#allocation6], 4294963200  ;;  %v538_v0 = vmov 0.0|0.0   ;;  %vm539_vm0 = vmmov 0   ;;  %v540_v1 = vmov 0.0   ;;  %v61_v2 = vld [vmem:[#allocation5] sm:$0xff] }
  0x37   :  { %380 = vmatprep.subr.bf16.mxu0 %v538_v0  ;;  %342 = vmatprep.mubr.msk.f32.mxu0 %vm539_vm0, %v540_v1  ;;  %v62_v3 = vld [vmem:[#allocation5 + $0x8] sm:$0xff]  ;;  %v63_v4 = vld [vmem:[#allocation5 + $0x10] sm:$0xff]  ;;  %v64_v6 = vld [vmem:[#allocation5 + $0x18] sm:$0xff] }
  0x38   :  { %404 = vmatprep.subr.bf16.mxu1 %v538_v0  ;;  %377 = vmatprep.mubr.msk.f32.mxu1 %vm539_vm0, %v540_v1  ;;  %v381_v5 = vpack.c.bf16 %v62_v3, %v61_v2  ;;  %v384_v7 = vpack.c.bf16 %v64_v6, %v63_v4  ;;  %v65_v8 = vld [vmem:[#allocation5 + $0x20] sm:$0xff]  ;;  %v66_v9 = vld [vmem:[#allocation5 + $0x28] sm:$0xff]  ;;  %v67_v14 = vld [vmem:[#allocation5 + $0x30] sm:$0xff] }
  0x39   :  { %v164_v10 = vld [vmem:[#allocation7] sm:$0xff]  ;;  %v165_v11 = vld [vmem:[#allocation7 + $0x8] sm:$0xff]  ;;  %v387_v12 = vpack.c.bf16 %v66_v9, %v65_v8  ;;  %v68_v15 = vld [vmem:[#allocation5 + $0x38] sm:$0xff] }
  0x3a   :  { %382 = vmatpush3.bf16.msra.mxu0 %v381_v5  ;;  %v405_v13 = vpack.c.bf16 %v165_v11, %v164_v10  ;;  %v390_v16 = vpack.c.bf16 %v68_v15, %v67_v14  ;;  %v69_v17 = vld [vmem:[#allocation5 + $0x40] sm:$0xff]  ;;  %v70_v18 = vld [vmem:[#allocation5 + $0x48] sm:$0xff]  ;;  %v71_v20 = vld [vmem:[#allocation5 + $0x50] sm:$0xff] }
  0x3b   :  { %383 = vmatprep.subr.bf16.mxu0 %v538_v0  ;;  %v393_v19 = vpack.c.bf16 %v70_v18, %v69_v17  ;;  %v72_v21 = vld [vmem:[#allocation5 + $0x58] sm:$0xff]  ;;  %v73_v23 = vld [vmem:[#allocation5 + $0x60] sm:$0xff]  ;;  %v74_v24 = vld [vmem:[#allocation5 + $0x68] sm:$0xff] }
  0x3c   :  { %406 = vmatpush3.bf16.msra.mxu1 %v405_v13  ;;  %v396_v22 = vpack.c.bf16 %v72_v21, %v71_v20  ;;  %v399_v25 = vpack.c.bf16 %v74_v24, %v73_v23  ;;  %v75_v26 = vld [vmem:[#allocation5 + $0x70] sm:$0xff]  ;;  %v76_v27 = vld [vmem:[#allocation5 + $0x78] sm:$0xff]  ;;  %v168_v33 = vld [vmem:[#allocation7 + $0x20] sm:$0xff] }
  0x3d   :  { %407 = vmatprep.subr.bf16.mxu1 %v538_v0  ;;  %v402_v28 = vpack.c.bf16 %v76_v27, %v75_v26  ;;  %v60_v29 = vld [vmem:[#allocation2] sm:$0xff]  ;;  %v166_v30 = vld [vmem:[#allocation7 + $0x10] sm:$0xff]  ;;  %v169_v34 = vld [vmem:[#allocation7 + $0x28] sm:$0xff] }
  0x3e   :  { %385 = vmatpush3.bf16.msra.mxu0 %v384_v7  ;;  %v167_v31 = vld [vmem:[#allocation7 + $0x18] sm:$0xff]  ;;  %v411_v35 = vpack.c.bf16 %v169_v34, %v168_v33  ;;  %v170_v36 = vld [vmem:[#allocation7 + $0x30] sm:$0xff]  ;;  %v172_v39 = vld [vmem:[#allocation7 + $0x40] sm:$0xff] }
  0x3f   :  { %386 = vmatprep.subr.bf16.mxu0 %v538_v0  ;;  %v408_v32 = vpack.c.bf16 %v167_v31, %v166_v30  ;;  %v171_v37 = vld [vmem:[#allocation7 + $0x38] sm:$0xff]  ;;  %v173_v40 = vld [vmem:[#allocation7 + $0x48] sm:$0xff]  ;;  %v174_v42 = vld [vmem:[#allocation7 + $0x50] sm:$0xff] }
  0x40   :  { %v414_v38 = vpack.c.bf16 %v171_v37, %v170_v36  ;;  %v417_v41 = vpack.c.bf16 %v173_v40, %v172_v39  ;;  %v175_v43 = vld [vmem:[#allocation7 + $0x58] sm:$0xff]  ;;  %v176_v45 = vld [vmem:[#allocation7 + $0x60] sm:$0xff]  ;;  %v177_v46 = vld [vmem:[#allocation7 + $0x68] sm:$0xff] }
  0x41   :  { %409 = vmatpush3.bf16.msra.mxu1 %v408_v32  ;;  %v420_v44 = vpack.c.bf16 %v175_v43, %v174_v42  ;;  %v423_v47 = vpack.c.bf16 %v177_v46, %v176_v45  ;;  %v178_v48 = vld [vmem:[#allocation7 + $0x70] sm:$0xff]  ;;  %v179_v49 = vld [vmem:[#allocation7 + $0x78] sm:$0xff] }
  0x42   :  { %388 = vmatpush3.bf16.msra.mxu0 %v387_v12  ;;  %410 = vmatprep.subr.bf16.mxu1 %v538_v0  ;;  %v426_v50 = vpack.c.bf16 %v179_v49, %v178_v48  ;;  %v274_v51 = vld [vmem:[%s650_s2] ss:$0 sm:$0xff]  ;;  %s541_s2 = smov [#allocation8]  }
  0x43   :  { %389 = vmatprep.subr.bf16.mxu0 %v538_v0  ;;  %s264_s7 = sshll.u32 %s541_s2, 4  ;;  %s265_s7 = int_to_ptr.vmem [resolvable:$true] %s264_s7 }
  0x44   :  { %s505_s8 = scalar_lea.vmem %s265_s7, 128  ;;  %p510_p11 = scmp.lt.s32.totalorder %s265_s7, %s265_s7 }
  0x45   :  { %412 = vmatpush3.bf16.msra.mxu1 %v411_v35  ;;  %p506_p10 = scmp.ne.s32.totalorder %s265_s7, %s505_s8  ;;  %p511_p12 = scmp.lt.s32.totalorder %s505_s8, %s505_s8 }
  0x46   :  { %391 = vmatpush3.bf16.msra.mxu0 %v390_v16  ;;  %413 = vmatprep.subr.bf16.mxu1 %v538_v0 }
  0x47   :  { %392 = vmatprep.subr.bf16.mxu0 %v538_v0  ;;  %p512_p13 = por %p511_p12, %p510_p11 }
  0x49   :  { %415 = vmatpush3.bf16.msra.mxu1 %v414_v38  ;;  %p513_p0 = pnand %p512_p13, %p506_p10 }
  0x4a   :  { %394 = vmatpush3.bf16.msra.mxu0 %v393_v19  ;;  %416 = vmatprep.subr.bf16.mxu1 %v538_v0 }
  0x4b   :  { %395 = vmatprep.subr.bf16.mxu0 %v538_v0 }
  0x4d   :  { %418 = vmatpush3.bf16.msra.mxu1 %v417_v41 }
  0x4e   :  { %397 = vmatpush3.bf16.msra.mxu0 %v396_v22  ;;  %419 = vmatprep.subr.bf16.mxu1 %v538_v0 }
  0x4f   :  { %398 = vmatprep.subr.bf16.mxu0 %v538_v0 }
  0x51   :  { %421 = vmatpush3.bf16.msra.mxu1 %v420_v44 }
  0x52   :  { %400 = vmatpush3.bf16.msra.mxu0 %v399_v25  ;;  %422 = vmatprep.subr.bf16.mxu1 %v538_v0 }
  0x53   :  { %401 = vmatprep.subr.bf16.mxu0 %v538_v0 }
  0x55   :  { %424 = vmatpush3.bf16.msra.mxu1 %v423_v47 }
  0x56   :  { %403 = vmatpush3.bf16.msra.mxu0 %v402_v28  ;;  %425 = vmatprep.subr.bf16.mxu1 %v538_v0  ;;  %v275_v0 = vld [vmem:[%s652_s4] ss:$0 sm:$0xff] }
  0x59   :  { %343 = vmatmul.mubr.f32.vlgmr.msra.gmra.mrb[0].mxu0 %v60_v29  ;;  %427 = vmatpush3.bf16.msra.mxu1 %v426_v50 }
 0x12c   :  { %v150_v52 = vpop.f32.mrb[0].mxu0 }
 0x12d   :  { %v151_v53 = vadd.f32 %v274_v51, %v150_v52  ;;  %v344_v54 = vpop.f32.mrb[1].mxu0 }
 0x12f   :  { %v156_v55 = vmul.f32 0.044715, %v151_v53  ;;  %v155_v57 = vmul.f32 0.7978846, %v151_v53  ;;  %v154_v61 = vmul.f32 0.5, %v151_v53 }
 0x131   :  { %v157_v56 = vmul.f32 %v156_v55, %v151_v53 }
 0x133   :  { %v158_v58 = vadd.f32 1.0, %v157_v56 }
 0x135   :  { %v159_v59 = vmul.f32 %v158_v58, %v155_v57 }
 0x137   :  { %437 = vtanh.f32 %v159_v59 }
 0x141   :  { %v438_v60 = vpop.eup %437 }
 0x142   :  { %v161_v62 = vadd.f32 1.0, %v438_v60 }
 0x144   :  { %v162_v63 = vmul.f32 %v161_v62, %v154_v61 }
 0x146   :  { %v163_v1 = vadd.f32 %v162_v63, %v60_v29 }
 0x148   :  { %378 = vmatmul.mubr.f32.vlgmr.msra.gmra.mrb[0].mxu1 %v163_v1 }
 0x21b   :  { %v253_v2 = vpop.f32.mrb[0].mxu1 }
 0x21c   :  { %v254_v3 = vadd.f32 %v275_v0, %v253_v2  ;;  %v379_v4 = vpop.f32.mrb[1].mxu1 }
 0x21e   :  { %257 = vst [vmem:[#allocation8] sm:$0xff] %v254_v3 }
 0x21f   :  { %516 = shalt.err (!%p513_p0)
}
 0x220   :  { %s517_s11 = scalar_lea.hbm %s653_s5, 128 }
 0x221   :  { %p518_p1 = scmp.ne.s32.totalorder %s653_s5, %s517_s11  ;;  %p521_p2 = scmp.lt.u32.totalorder %s517_s11, %s653_s5 }
 0x223   :  { %p523_p3 = pnand %p521_p2, %p518_p1 }
 0x225   :  { %526 = shalt.err (!%p523_p3)
}
 0x226   :  { %267 = dma.vmem_to_hbm [thread:$0]  %s265_s7, 128, %s653_s5, [#allocation4]  }
 0x227   :  { %531 = dma.done.wait [#allocation4], 128  }
 0x228   :  { %532 = vsyncadd [#allocation4], 4294967168 }
 0x229   :  { %271 = vsyncpa [#allocation3], 1 }
 0x22a   :  { %272 = vsyncpa [#allocation6], 1 }
 0x22b   :  { %273 = vsyncpa [#allocation4], 1 }

// kernel: tpu_custom_call.1
= control target key start
LH: loop header
LB: loop body
LE: loop exit
PB: predicated region body
PF: predicated region fallthrough
CT: control target
= control target key end

     0   :  { %10 = vsyncpa [#allocation3], 0  ;;  %s648_s0 = inlined_call_operand.hbm [shape: f32[8,128], index: 0, kind: input, shape index: {}]   ;;  %s649_s1 = inlined_call_operand.hbm [shape: f32[128,128], index: 1, kind: input, shape index: {}]   ;;  %s650_s2 = inlined_call_operand.vmem [shape: f32[1,128], index: 2, kind: input, shape index: {}]   ;;  %s651_s3 = inlined_call_operand.hbm [shape: f32[128,128], index: 3, kind: input, shape index: {}]   ;;  %s652_s4 = inlined_call_operand.vmem [shape: f32[1,128], index: 4, kind: input, shape index: {}]   ;;  %s653_s5 = inlined_call_operand.hbm [shape: f32[8,128], index: 5, kind: output, shape index: {}]  }
   0x1   :  { %11 = vsyncpa [#allocation6], 0 }
   0x2   :  { %12 = vsyncpa [#allocation4], 0  ;;  %s533_s18 = smov [#allocation5]   ;;  %s439_s22 = scalar_lea.hbm %s649_s1, 2048 }
   0x3   :  { %s28_s19 = sshll.u32 %s533_s18, 4  ;;  %p440_p0 = scmp.ne.s32.totalorder %s649_s1, %s439_s22  ;;  %s29_s19 = int_to_ptr.vmem [resolvable:$true] %s28_s19 }
   0x4   :  { %p443_p1 = scmp.lt.u32.totalorder %s439_s22, %s649_s1 }
   0x6   :  { %p445_p2 = pnand %p443_p1, %p440_p0 }
   0x8   :  { %448 = shalt.err (!%p445_p2)
}
   0x9   :  { %s449_s27 = scalar_lea.vmem %s29_s19, 2048  ;;  %p454_p4 = scmp.lt.s32.totalorder %s29_s19, %s29_s19 }
   0xa   :  { %p450_p3 = scmp.ne.s32.totalorder %s29_s19, %s449_s27  ;;  %p455_p5 = scmp.lt.s32.totalorder %s449_s27, %s449_s27 }
   0xc   :  { %p456_p6 = por %p455_p5, %p454_p4 }
   0xe   :  { %p457_p7 = pnand %p456_p6, %p450_p3 }
  0x10   :  { %460 = shalt.err (!%p457_p7)
}
  0x11   :  { %s534_s28 = smov 128   ;;  %s535_s29 = smov 8  }
  0x12   :  { %34 = dma.hbm_to_vmem [thread:$0]  %s649_s1, 2048, %s29_s19, [#allocation6], %s534_s28, %s534_s28, %s535_s29  }
  0x13   :  { %s536_s7 = smov [#allocation2]   ;;  %s537_s9 = smov [#allocation7]  }
  0x14   :  { %s19_s8 = sshll.u32 %s536_s7, 4  ;;  %s42_s10 = sshll.u32 %s537_s9, 4  ;;  %s20_s8 = int_to_ptr.vmem [resolvable:$true] %s19_s8  ;;  %s43_s10 = int_to_ptr.vmem [resolvable:$true] %s42_s10 }
  0x15   :  { %s461_s13 = scalar_lea.hbm %s648_s0, 128 }
  0x16   :  { %p462_p8 = scmp.ne.s32.totalorder %s648_s0, %s461_s13  ;;  %p465_p9 = scmp.lt.u32.totalorder %s461_s13, %s648_s0 }
  0x18   :  { %p467_p10 = pnand %p465_p9, %p462_p8 }
  0x1a   :  { %470 = shalt.err (!%p467_p10)
}
  0x1b   :  { %s471_s1 = scalar_lea.vmem %s20_s8, 128  ;;  %p476_p12 = scmp.lt.s32.totalorder %s20_s8, %s20_s8 }
  0x1c   :  { %p472_p11 = scmp.ne.s32.totalorder %s20_s8, %s471_s1  ;;  %p477_p13 = scmp.lt.s32.totalorder %s471_s1, %s471_s1 }
  0x1e   :  { %p478_p0 = por %p477_p13, %p476_p12 }
  0x20   :  { %p479_p1 = pnand %p478_p0, %p472_p11 }
  0x22   :  { %482 = shalt.err (!%p479_p1)
}
  0x23   :  { %22 = dma.hbm_to_vmem [thread:$0]  %s648_s0, 128, %s20_s8, [#allocation3]  }
  0x24   :  { %s483_s22 = scalar_lea.hbm %s651_s3, 2048 }
  0x25   :  { %p484_p2 = scmp.ne.s32.totalorder %s651_s3, %s483_s22  ;;  %p487_p3 = scmp.lt.u32.totalorder %s483_s22, %s651_s3 }
  0x27   :  { %p489_p4 = pnand %p487_p3, %p484_p2 }
  0x29   :  { %492 = shalt.err (!%p489_p4)
}
  0x2a   :  { %s493_s27 = scalar_lea.vmem %s43_s10, 2048  ;;  %p498_p6 = scmp.lt.s32.totalorder %s43_s10, %s43_s10 }
  0x2b   :  { %p494_p5 = scmp.ne.s32.totalorder %s43_s10, %s493_s27  ;;  %p499_p7 = scmp.lt.s32.totalorder %s493_s27, %s493_s27 }
  0x2d   :  { %p500_p8 = por %p499_p7, %p498_p6 }
  0x2f   :  { %p501_p9 = pnand %p500_p8, %p494_p5 }
  0x31   :  { %504 = shalt.err (!%p501_p9)
}
  0x32   :  { %48 = dma.hbm_to_vmem [thread:$0]  %s651_s3, 2048, %s43_s10, [#allocation6], %s534_s28, %s534_s28, %s535_s29  }
  0x33   :  { %527 = dma.done.wait [#allocation3], 128  }
  0x34   :  { %528 = vsyncadd [#allocation3], 4294967168 }
  0x35   :  { %529 = dma.done.wait [#allocation6], 4096  }
  0x36   :  { %530 = vsyncadd [#allocation6], 4294963200  ;;  %v538_v0 = vmov 0.0|0.0   ;;  %vm539_vm0 = vmmov 0   ;;  %v540_v1 = vmov 0.0   ;;  %v61_v2 = vld [vmem:[#allocation5] sm:$0xff] }
  0x37   :  { %380 = vmatprep.subr.bf16.mxu0 %v538_v0  ;;  %342 = vmatprep.mubr.msk.f32.mxu0 %vm539_vm0, %v540_v1  ;;  %v62_v3 = vld [vmem:[#allocation5 + $0x8] sm:$0xff]  ;;  %v63_v4 = vld [vmem:[#allocation5 + $0x10] sm:$0xff]  ;;  %v64_v6 = vld [vmem:[#allocation5 + $0x18] sm:$0xff] }
  0x38   :  { %404 = vmatprep.subr.bf16.mxu1 %v538_v0  ;;  %377 = vmatprep.mubr.msk.f32.mxu1 %vm539_vm0, %v540_v1  ;;  %v381_v5 = vpack.c.bf16 %v62_v3, %v61_v2  ;;  %v384_v7 = vpack.c.bf16 %v64_v6, %v63_v4  ;;  %v65_v8 = vld [vmem:[#allocation5 + $0x20] sm:$0xff]  ;;  %v66_v9 = vld [vmem:[#allocation5 + $0x28] sm:$0xff]  ;;  %v67_v14 = vld [vmem:[#allocation5 + $0x30] sm:$0xff] }
  0x39   :  { %v164_v10 = vld [vmem:[#allocation7] sm:$0xff]  ;;  %v165_v11 = vld [vmem:[#allocation7 + $0x8] sm:$0xff]  ;;  %v387_v12 = vpack.c.bf16 %v66_v9, %v65_v8  ;;  %v68_v15 = vld [vmem:[#allocation5 + $0x38] sm:$0xff] }
  0x3a   :  { %382 = vmatpush3.bf16.msra.mxu0 %v381_v5  ;;  %v405_v13 = vpack.c.bf16 %v165_v11, %v164_v10  ;;  %v390_v16 = vpack.c.bf16 %v68_v15, %v67_v14  ;;  %v69_v17 = vld [vmem:[#allocation5 + $0x40] sm:$0xff]  ;;  %v70_v18 = vld [vmem:[#allocation5 + $0x48] sm:$0xff]  ;;  %v71_v20 = vld [vmem:[#allocation5 + $0x50] sm:$0xff] }
  0x3b   :  { %383 = vmatprep.subr.bf16.mxu0 %v538_v0  ;;  %v393_v19 = vpack.c.bf16 %v70_v18, %v69_v17  ;;  %v72_v21 = vld [vmem:[#allocation5 + $0x58] sm:$0xff]  ;;  %v73_v23 = vld [vmem:[#allocation5 + $0x60] sm:$0xff]  ;;  %v74_v24 = vld [vmem:[#allocation5 + $0x68] sm:$0xff] }
  0x3c   :  { %406 = vmatpush3.bf16.msra.mxu1 %v405_v13  ;;  %v396_v22 = vpack.c.bf16 %v72_v21, %v71_v20  ;;  %v399_v25 = vpack.c.bf16 %v74_v24, %v73_v23  ;;  %v75_v26 = vld [vmem:[#allocation5 + $0x70] sm:$0xff]  ;;  %v76_v27 = vld [vmem:[#allocation5 + $0x78] sm:$0xff]  ;;  %v168_v33 = vld [vmem:[#allocation7 + $0x20] sm:$0xff] }
  0x3d   :  { %407 = vmatprep.subr.bf16.mxu1 %v538_v0  ;;  %v402_v28 = vpack.c.bf16 %v76_v27, %v75_v26  ;;  %v60_v29 = vld [vmem:[#allocation2] sm:$0xff]  ;;  %v166_v30 = vld [vmem:[#allocation7 + $0x10] sm:$0xff]  ;;  %v169_v34 = vld [vmem:[#allocation7 + $0x28] sm:$0xff] }
  0x3e   :  { %385 = vmatpush3.bf16.msra.mxu0 %v384_v7  ;;  %v167_v31 = vld [vmem:[#allocation7 + $0x18] sm:$0xff]  ;;  %v411_v35 = vpack.c.bf16 %v169_v34, %v168_v33  ;;  %v170_v36 = vld [vmem:[#allocation7 + $0x30] sm:$0xff]  ;;  %v172_v39 = vld [vmem:[#allocation7 + $0x40] sm:$0xff] }
  0x3f   :  { %386 = vmatprep.subr.bf16.mxu0 %v538_v0  ;;  %v408_v32 = vpack.c.bf16 %v167_v31, %v166_v30  ;;  %v171_v37 = vld [vmem:[#allocation7 + $0x38] sm:$0xff]  ;;  %v173_v40 = vld [vmem:[#allocation7 + $0x48] sm:$0xff]  ;;  %v174_v42 = vld [vmem:[#allocation7 + $0x50] sm:$0xff] }
  0x40   :  { %v414_v38 = vpack.c.bf16 %v171_v37, %v170_v36  ;;  %v417_v41 = vpack.c.bf16 %v173_v40, %v172_v39  ;;  %v175_v43 = vld [vmem:[#allocation7 + $0x58] sm:$0xff]  ;;  %v176_v45 = vld [vmem:[#allocation7 + $0x60] sm:$0xff]  ;;  %v177_v46 = vld [vmem:[#allocation7 + $0x68] sm:$0xff] }
  0x41   :  { %409 = vmatpush3.bf16.msra.mxu1 %v408_v32  ;;  %v420_v44 = vpack.c.bf16 %v175_v43, %v174_v42  ;;  %v423_v47 = vpack.c.bf16 %v177_v46, %v176_v45  ;;  %v178_v48 = vld [vmem:[#allocation7 + $0x70] sm:$0xff]  ;;  %v179_v49 = vld [vmem:[#allocation7 + $0x78] sm:$0xff] }
  0x42   :  { %388 = vmatpush3.bf16.msra.mxu0 %v387_v12  ;;  %410 = vmatprep.subr.bf16.mxu1 %v538_v0  ;;  %v426_v50 = vpack.c.bf16 %v179_v49, %v178_v48  ;;  %v274_v51 = vld [vmem:[%s650_s2] ss:$0 sm:$0xff]  ;;  %s541_s2 = smov [#allocation8]  }
  0x43   :  { %389 = vmatprep.subr.bf16.mxu0 %v538_v0  ;;  %s264_s7 = sshll.u32 %s541_s2, 4  ;;  %s265_s7 = int_to_ptr.vmem [resolvable:$true] %s264_s7 }
  0x44   :  { %s505_s8 = scalar_lea.vmem %s265_s7, 128  ;;  %p510_p11 = scmp.lt.s32.totalorder %s265_s7, %s265_s7 }
  0x45   :  { %412 = vmatpush3.bf16.msra.mxu1 %v411_v35  ;;  %p506_p10 = scmp.ne.s32.totalorder %s265_s7, %s505_s8  ;;  %p511_p12 = scmp.lt.s32.totalorder %s505_s8, %s505_s8 }
  0x46   :  { %391 = vmatpush3.bf16.msra.mxu0 %v390_v16  ;;  %413 = vmatprep.subr.bf16.mxu1 %v538_v0 }
  0x47   :  { %392 = vmatprep.subr.bf16.mxu0 %v538_v0  ;;  %p512_p13 = por %p511_p12, %p510_p11 }
  0x49   :  { %415 = vmatpush3.bf16.msra.mxu1 %v414_v38  ;;  %p513_p0 = pnand %p512_p13, %p506_p10 }
  0x4a   :  { %394 = vmatpush3.bf16.msra.mxu0 %v393_v19  ;;  %416 = vmatprep.subr.bf16.mxu1 %v538_v0 }
  0x4b   :  { %395 = vmatprep.subr.bf16.mxu0 %v538_v0 }
  0x4d   :  { %418 = vmatpush3.bf16.msra.mxu1 %v417_v41 }
  0x4e   :  { %397 = vmatpush3.bf16.msra.mxu0 %v396_v22  ;;  %419 = vmatprep.subr.bf16.mxu1 %v538_v0 }
  0x4f   :  { %398 = vmatprep.subr.bf16.mxu0 %v538_v0 }
  0x51   :  { %421 = vmatpush3.bf16.msra.mxu1 %v420_v44 }
  0x52   :  { %400 = vmatpush3.bf16.msra.mxu0 %v399_v25  ;;  %422 = vmatprep.subr.bf16.mxu1 %v538_v0 }
  0x53   :  { %401 = vmatprep.subr.bf16.mxu0 %v538_v0 }
  0x55   :  { %424 = vmatpush3.bf16.msra.mxu1 %v423_v47 }
  0x56   :  { %403 = vmatpush3.bf16.msra.mxu0 %v402_v28  ;;  %425 = vmatprep.subr.bf16.mxu1 %v538_v0  ;;  %v275_v0 = vld [vmem:[%s652_s4] ss:$0 sm:$0xff] }
  0x59   :  { %343 = vmatmul.mubr.f32.vlgmr.msra.gmra.mrb[0].mxu0 %v60_v29  ;;  %427 = vmatpush3.bf16.msra.mxu1 %v426_v50 }
 0x12c   :  { %v150_v52 = vpop.f32.mrb[0].mxu0 }
 0x12d   :  { %v151_v53 = vadd.f32 %v274_v51, %v150_v52  ;;  %v344_v54 = vpop.f32.mrb[1].mxu0 }
 0x12f   :  { %v156_v55 = vmul.f32 0.044715, %v151_v53  ;;  %v155_v57 = vmul.f32 0.7978846, %v151_v53  ;;  %v154_v61 = vmul.f32 0.5, %v151_v53 }
 0x131   :  { %v157_v56 = vmul.f32 %v156_v55, %v151_v53 }
 0x133   :  { %v158_v58 = vadd.f32 1.0, %v157_v56 }
 0x135   :  { %v159_v59 = vmul.f32 %v158_v58, %v155_v57 }
 0x137   :  { %437 = vtanh.f32 %v159_v59 }
 0x141   :  { %v438_v60 = vpop.eup %437 }
 0x142   :  { %v161_v62 = vadd.f32 1.0, %v438_v60 }
 0x144   :  { %v162_v63 = vmul.f32 %v161_v62, %v154_v61 }
 0x146   :  { %v163_v1 = vadd.f32 %v162_v63, %v60_v29 }
 0x148   :  { %378 = vmatmul.mubr.f32.vlgmr.msra.gmra.mrb[0].mxu1 %v163_v1 }
 0x21b   :  { %v253_v2 = vpop.f32.mrb[0].mxu1 }
 0x21c   :  { %v254_v3 = vadd.f32 %v275_v0, %v253_v2  ;;  %v379_v4 = vpop.f32.mrb[1].mxu1 }
 0x21e   :  { %257 = vst [vmem:[#allocation8] sm:$0xff] %v254_v3 }
 0x21f   :  { %516 = shalt.err (!%p513_p0)
}
 0x220   :  { %s517_s11 = scalar_lea.hbm %s653_s5, 128 }
 0x221   :  { %p518_p1 = scmp.ne.s32.totalorder %s653_s5, %s517_s11  ;;  %p521_p2 = scmp.lt.u32.totalorder %s517_s11, %s653_s5 }
 0x223   :  { %p523_p3 = pnand %p521_p2, %p518_p1 }
 0x225   :  { %526 = shalt.err (!%p523_p3)
}
 0x226   :  { %267 = dma.vmem_to_hbm [thread:$0]  %s265_s7, 128, %s653_s5, [#allocation4]  }
 0x227   :  { %531 = dma.done.wait [#allocation4], 128  }
 0x228   :  { %532 = vsyncadd [#allocation4], 4294967168 }
 0x229   :  { %271 = vsyncpa [#allocation3], 1 }
 0x22a   :  { %272 = vsyncpa [#allocation6], 1 }
 0x22b   :  { %273 = vsyncpa [#allocation4], 1 }

</bundles_post_ra>
